<compile_context>
chip_gen: v5e
topology: v5e:2x2
jax: 0.10.0
libtpu: 0.0.40
codegen_flags: <defaults>
</compile_context>

<pallas_src>
import jax
import jax.numpy as jnp
from jax.experimental import pallas as pl
from jax.experimental.pallas import tpu as pltpu


def _planar_flow_kernel(sc_ref, z_ref, w_ref, s_ref, zt_ref, ldj_ref):
    """One (TILE_N, D) row-tile of the planar flow.

    sc_ref : SMEM (2,) f32  -> [bias, sum(scale * weight)]
    z_ref  : VMEM (T, D)    -> input rows
    w_ref  : VMEM (1, D)    -> weight (resident across grid)
    s_ref  : VMEM (1, D)    -> scale  (resident across grid)
    zt_ref : VMEM (T, D)    -> transformed rows
    ldj_ref: VMEM (T, 1)    -> log|det J| per row
    """
    z = z_ref[...]                       # (T, D)
    w = w_ref[...]                       # (1, D)
    s = s_ref[...]                       # (1, D)
    b = sc_ref[0]                        # scalar bias        (SMEM)
    sw = sc_ref[1]                       # scalar scale.weight (SMEM, hoisted)

    # linear = z @ w.T + b : VPU multiply + XLU lane reduce (no MXU).
    linear = jnp.sum(z * w, axis=-1, keepdims=True) + b        # (T, 1)
    act = jnp.tanh(linear)                                     # (T, 1)  EUP

    # z_transformed = z + scale * act    (broadcast (1,D) * (T,1))
    zt_ref[...] = z + s * act                                  # (T, D)

    # scale @ psi.T per row == (scale . weight) * (1 - act^2)
    act_deriv = 1.0 - act * act                                # (T, 1)
    det_jacobian = jnp.abs(1.0 + act_deriv * sw)               # (T, 1)
    ldj_ref[...] = jnp.log(1e-4 + det_jacobian)                # (T, 1)  EUP


def _choose_tile_n(N, D):
    """Largest row tile whose double-buffered working set stays ~16 MiB."""
    budget_bytes = 16 * 1024 * 1024
    # per row: z-in + zt-out tiles (f32, double-buffered) + lane-padded (T,1)
    # log-det column (also double-buffered).
    bytes_per_row = 2 * 2 * 4 * D + 2 * 4 * 128
    t = max(8, budget_bytes // bytes_per_row)
    t = min(t, 4096)
    t = (t // 8) * 8
    if t >= N:
        return N          # full array -> single block (always legal)
    return t


@jax.jit
def planar_flow(z, weight, scale, bias):
    """z: (N, D) f32; weight/scale: (1, D) f32; bias: (1,) f32."""
    N, D = z.shape
    tile_n = _choose_tile_n(N, D)
    grid = (pl.cdiv(N, tile_n),)

    # SMEM scalar-prefetch payload: [bias, sum(scale * weight)].
    scalars = jnp.stack(
        [bias.reshape(()), jnp.sum(scale * weight)]
    ).astype(jnp.float32)

    zt, ldj_col = pl.pallas_call(
        _planar_flow_kernel,
        out_shape=(
            jax.ShapeDtypeStruct((N, D), z.dtype),
            jax.ShapeDtypeStruct((N, 1), jnp.float32),
        ),
        grid_spec=pltpu.PrefetchScalarGridSpec(
            num_scalar_prefetch=1,
            grid=grid,
            in_specs=[
                pl.BlockSpec((tile_n, D), lambda i, sc: (i, 0)),   # z tile
                pl.BlockSpec((1, D), lambda i, sc: (0, 0)),        # weight (resident)
                pl.BlockSpec((1, D), lambda i, sc: (0, 0)),        # scale  (resident)
            ],
            out_specs=[
                pl.BlockSpec((tile_n, D), lambda i, sc: (i, 0)),   # z_transformed
                pl.BlockSpec((tile_n, 1), lambda i, sc: (i, 0)),   # log-det column
            ],
        ),
        compiler_params=pltpu.CompilerParams(
            dimension_semantics=("parallel",),   # rows independent -> both v7x TCs
            vmem_limit_bytes=32 * 1024 * 1024,
        ),
    )(scalars, z, weight, scale)

    # Match torch: det_jacobian / log_det_jacobian have shape (1, N).
    return zt, ldj_col.T


def planar_flow_ref(z, weight, scale, bias):
    linear = z @ weight.T + bias                      # (N, 1)
    act = jnp.tanh(linear)
    psi = (1.0 - act ** 2) * weight                   # (N, D)
    z_t = z + scale * act
    det = jnp.abs(1.0 + scale @ psi.T)                # (1, N)
    return z_t, jnp.log(1e-4 + det)


def _check(N, D, key):
    k1, k2, k3, k4 = jax.random.split(key, 4)
    weight = jax.random.normal(k1, (1, D), jnp.float32) * 0.01
    scale = jax.random.normal(k2, (1, D), jnp.float32) * 0.01
    bias = jax.random.normal(k3, (1,), jnp.float32)
    z = jax.random.normal(k4, (N, D), jnp.float32)

    zt, ldj = planar_flow(z, weight, scale, bias)
    jax.block_until_ready((zt, ldj))

    zt_ref, ldj_ref = planar_flow_ref(z, weight, scale, bias)
    assert zt.shape == (N, D) and ldj.shape == (1, N)
    assert jnp.allclose(zt, zt_ref, atol=1e-5, rtol=1e-5)
    assert jnp.allclose(ldj, ldj_ref, atol=1e-5, rtol=1e-5)


if __name__ == "__main__":
    key = jax.random.PRNGKey(0)
    k_small, k_big = jax.random.split(key, 2)

    # Small shape matching the PyTorch module defaults (batch=8, latent=32).
    _check(N=8, D=32, key=k_small)
    # Larger shape exercising the multi-tile, pipelined, parallel-grid path.
    _check(N=4096, D=128, key=k_big)

    print("KERNEL_OK")
</pallas_src>

<mosaic_0001>
module attributes {stable_mosaic.version = 11 : i64} {
  func.func @_planar_flow_kernel(%arg0: i32, %arg1: memref<2xf32, #tpu.memory_space<smem>>, %arg2: memref<8x32xf32, #tpu.memory_space<vmem>>, %arg3: memref<1x32xf32, #tpu.memory_space<vmem>>, %arg4: memref<1x32xf32, #tpu.memory_space<vmem>>, %arg5: memref<8x32xf32, #tpu.memory_space<vmem>>, %arg6: memref<8x1xf32, #tpu.memory_space<vmem>>) attributes {dimension_semantics = [#tpu.dimension_semantics<parallel>], iteration_bounds = array<i64: 1>, scalar_prefetch = 1 : i64, scratch_operands = 0 : i64, tpu.core_type = #tpu.core_type<tc>, window_params = [{transform_indices = @transform_0, window_bounds = array<i64: 8, 32>}, {pipeline_mode = #tpu.pipeline_mode<synchronous>, transform_indices = @transform_1, window_bounds = array<i64: 1, 32>}, {pipeline_mode = #tpu.pipeline_mode<synchronous>, transform_indices = @transform_2, window_bounds = array<i64: 1, 32>}, {transform_indices = @transform_3, window_bounds = array<i64: 8, 32>}, {transform_indices = @transform_4, window_bounds = array<i64: 8, 1>}]} {
    %c0 = arith.constant 0 : index
    %c0_0 = arith.constant 0 : index
    %0 = vector.load %arg2[%c0, %c0_0] : memref<8x32xf32, #tpu.memory_space<vmem>>, vector<8x32xf32>
    %c0_1 = arith.constant 0 : index
    %c0_2 = arith.constant 0 : index
    %1 = vector.load %arg3[%c0_1, %c0_2] : memref<1x32xf32, #tpu.memory_space<vmem>>, vector<1x32xf32>
    %c0_3 = arith.constant 0 : index
    %c0_4 = arith.constant 0 : index
    %2 = vector.load %arg4[%c0_3, %c0_4] : memref<1x32xf32, #tpu.memory_space<vmem>>, vector<1x32xf32>
    %c0_5 = arith.constant 0 : index
    %3 = memref.load %arg1[%c0_5] : memref<2xf32, #tpu.memory_space<smem>>
    %c1 = arith.constant 1 : index
    %4 = memref.load %arg1[%c1] : memref<2xf32, #tpu.memory_space<smem>>
    %5 = vector.broadcast %1 : vector<1x32xf32> to vector<8x32xf32>
    %6 = arith.mulf %0, %5 : vector<8x32xf32>
    %cst = arith.constant dense<0.000000e+00> : vector<8xf32>
    %7 = vector.multi_reduction <add>, %6, %cst [1] : vector<8x32xf32> to vector<8xf32>
    %8 = vector.shape_cast %7 : vector<8xf32> to vector<8x1xf32>
    %9 = vector.broadcast %3 : f32 to vector<8x1xf32>
    %10 = arith.addf %8, %9 : vector<8x1xf32>
    %11 = math.tanh %10 : vector<8x1xf32>
    %12 = vector.broadcast %2 : vector<1x32xf32> to vector<8x32xf32>
    %13 = vector.broadcast %11 : vector<8x1xf32> to vector<8x32xf32>
    %14 = arith.mulf %12, %13 : vector<8x32xf32>
    %15 = arith.addf %0, %14 : vector<8x32xf32>
    %c0_6 = arith.constant 0 : index
    %c0_7 = arith.constant 0 : index
    %16 = vector.load %arg5[%c0_6, %c0_7] : memref<8x32xf32, #tpu.memory_space<vmem>>, vector<8x32xf32>
    tpu.vector_store %arg5[%c0_6, %c0_7], %15 {strides = array<i32>} : memref<8x32xf32, #tpu.memory_space<vmem>>, vector<8x32xf32>,
    %17 = arith.mulf %11, %11 : vector<8x1xf32>
    %cst_8 = arith.constant 1.000000e+00 : f32
    %18 = vector.broadcast %cst_8 : f32 to vector<8x1xf32>
    %19 = arith.subf %18, %17 : vector<8x1xf32>
    %20 = vector.broadcast %4 : f32 to vector<8x1xf32>
    %21 = arith.mulf %19, %20 : vector<8x1xf32>
    %cst_9 = arith.constant 1.000000e+00 : f32
    %22 = vector.broadcast %cst_9 : f32 to vector<8x1xf32>
    %23 = arith.addf %22, %21 : vector<8x1xf32>
    %24 = math.absf %23 : vector<8x1xf32>
    %cst_10 = arith.constant 9.99999974E-5 : f32
    %25 = vector.broadcast %cst_10 : f32 to vector<8x1xf32>
    %26 = arith.addf %25, %24 : vector<8x1xf32>
    %27 = math.log %26 : vector<8x1xf32>
    %c0_11 = arith.constant 0 : index
    %c0_12 = arith.constant 0 : index
    %28 = vector.load %arg6[%c0_11, %c0_12] : memref<8x1xf32, #tpu.memory_space<vmem>>, vector<8x1xf32>
    tpu.vector_store %arg6[%c0_11, %c0_12], %27 {strides = array<i32>} : memref<8x1xf32, #tpu.memory_space<vmem>>, vector<8x1xf32>,
    return
  }
  func.func @transform_0(%arg0: i32, %arg1: memref<2xf32, #tpu.memory_space<smem>>) -> (i32, i32) {
    %c0_i32 = arith.constant 0 : i32
    %c0_i32_0 = arith.constant 0 : i32
    return %arg0, %c0_i32 : i32, i32
  }
  func.func @transform_1(%arg0: i32, %arg1: memref<2xf32, #tpu.memory_space<smem>>) -> (i32, i32) {
    %c0_i32 = arith.constant 0 : i32
    %c0_i32_0 = arith.constant 0 : i32
    %c0_i32_1 = arith.constant 0 : i32
    return %c0_i32, %c0_i32_0 : i32, i32
  }
  func.func @transform_2(%arg0: i32, %arg1: memref<2xf32, #tpu.memory_space<smem>>) -> (i32, i32) {
    %c0_i32 = arith.constant 0 : i32
    %c0_i32_0 = arith.constant 0 : i32
    %c0_i32_1 = arith.constant 0 : i32
    return %c0_i32, %c0_i32_0 : i32, i32
  }
  func.func @transform_3(%arg0: i32, %arg1: memref<2xf32, #tpu.memory_space<smem>>) -> (i32, i32) {
    %c0_i32 = arith.constant 0 : i32
    %c0_i32_0 = arith.constant 0 : i32
    return %arg0, %c0_i32 : i32, i32
  }
  func.func @transform_4(%arg0: i32, %arg1: memref<2xf32, #tpu.memory_space<smem>>) -> (i32, i32) {
    %c0_i32 = arith.constant 0 : i32
    %c0_i32_0 = arith.constant 0 : i32
    return %arg0, %c0_i32 : i32, i32
  }
}

</mosaic_0001>

<bundles_post_ra>
// kernel: planar_flow.1
= control target key start
LH: loop header
LB: loop body
LE: loop exit
PB: predicated region body
PF: predicated region fallthrough
CT: control target
= control target key end

     0   :  { %s170_s21 = smov [#allocation3]   ;;  %s223_s0 = inlined_call_operand.vmem [shape: f32[2], index: 0, kind: input, shape index: {}]   ;;  %s224_s1 = inlined_call_operand.hbm [shape: f32[8,32], index: 1, kind: input, shape index: {}]   ;;  %s225_s2 = inlined_call_operand.vmem [shape: f32[1,32], index: 2, kind: input, shape index: {}]   ;;  %s226_s3 = inlined_call_operand.vmem [shape: f32[1,32], index: 3, kind: input, shape index: {}]   ;;  %s227_s4 = inlined_call_operand.hbm [shape: f32[8,32], index: 4, kind: output, shape index: {0}]   ;;  %s228_s5 = inlined_call_operand.vmem [shape: f32[8,1], index: 5, kind: output, shape index: {1}]  }
   0x1   :  { %s12_s20 = sshll.u32 %s223_s0, 4  ;;  %s13_s20 = int_to_ptr.vmem [resolvable:$true] %s12_s20 }
   0x2   :  { %15 = dma.vmem_to_smem %s13_s20, 16, %s170_s21, [#allocation2] }
   0x3   :  { %164 = dma.done.wait [#allocation2], 16 }
   0x4   :  { %165 = vsyncadd [#allocation2], 4294967280 }
   0x5   :  { %18 = sfence }
   0x6   :  { %19 = vsyncpa [#allocation5], 0 }
   0x7   :  { %20 = vsyncpa [#allocation6], 0  ;;  %s26_s24 = sshll.u32 %s224_s1, 4  ;;  %s171_s25 = smov [#allocation4]   ;;  %s27_s24 = int_to_ptr.hbm [resolvable:$true] %s26_s24 }
   0x8   :  { %s28_s26 = sshll.u32 %s171_s25, 4  ;;  %s29_s26 = int_to_ptr.vmem [resolvable:$true] %s28_s26 }
   0x9   :  { %31 = dma.hbm_to_vmem [thread:$0]  %s27_s24, 128, %s29_s26, [#allocation5]  }
   0xa   :  { %166 = dma.done.wait [#allocation5], 128  }
   0xb   :  { %167 = vsyncadd [#allocation5], 4294967168  ;;  %v40_v0 = vld [vmem:[#allocation4] sm:$0xff]  ;;  %vm49_vm0 = vcmask 261120   ;;  %s43_s28 = sld [smem:[#allocation3]]  ;;  %s172_s6 = smov [#allocation7]  }
   0xc   :  { %v98_v1 = vld [vmem:[%s225_s2] ss:$0 sm:$0xff]  ;;  %s94_s1 = sld [smem:[#allocation3 + $0x1]]  ;;  %s78_s7 = sshll.u32 %s172_s6, 4  ;;  %vm71_vm1 = vcmask 7168   ;;  %s79_s7 = int_to_ptr.vmem [resolvable:$true] %s78_s7 }
   0xd   :  { %v48_v2 = vmul.f32 %v98_v1, %v40_v0  ;;  %v99_v7 = vld [vmem:[%s226_s3] ss:$0 sm:$0xff]  ;;  %s80_s9 = sshll.u32 %s227_s4, 4  ;;  %s81_s9 = int_to_ptr.hbm [resolvable:$true] %s80_s9 }
   0xf   :  { %v50_v3 = vsel %vm49_vm0, %v48_v2, 0.0 }
  0x10   :  { %51 = vadd.xlane.f32.xlu0 %v50_v3 }
  0x11   :  { %v53_v4 = vstv %s43_s28 }
  0x12   :  { %v64_v11 = vstv %s94_s1 }
  0x83   :  { %v52_v5 = vpop.xlane.xlu0 %51 }
  0x84   :  { %v54_v6 = vadd.f32 %v53_v4, %v52_v5 }
  0x86   :  { %100 = vtanh.f32 %v54_v6 }
  0x8c   :  { %v101_v8 = vpop.eup %100 }
  0x8d   :  { %v59_v9 = vmul.f32 %v101_v8, %v99_v7  ;;  %v62_v10 = vmul.f32 %v101_v8, %v101_v8 }
  0x8f   :  { %v63_v12 = vsub.f32 1.0, %v62_v10  ;;  %v60_v13 = vadd.f32 %v59_v9, %v40_v0 }
  0x91   :  { %v65_v14 = vmul.f32 %v64_v11, %v63_v12  ;;  %61 = vst.msk [vmem:[#allocation7] sm:$0xff] %vm49_vm0, %v60_v13 }
  0x92   :  { %83 = dma.vmem_to_hbm [thread:$0]  %s79_s7, 128, %s81_s9, [#allocation6]  }
  0x93   :  { %v66_v15 = vadd.f32 1.0, %v65_v14 }
  0x95   :  { %v67_v16 = vand.u32 2147483647, %v66_v15 }
  0x97   :  { %v68_v17 = vadd.f32 0.0001, %v67_v16 }
  0x99   :  { %102 = vlog2.f32 %v68_v17 }
  0x9f   :  { %v103_v18 = vpop.eup %102 }
  0xa0   :  { %v70_v19 = vmul.f32 0.6931472, %v103_v18 }
  0xa2   :  { %72 = vst.msk [vmem:[%s228_s5] sm:$0xff] %vm71_vm1, %v70_v19 }
  0xa3   :  { %168 = dma.done.wait [#allocation6], 128  }
  0xa4   :  { %169 = vsyncadd [#allocation6], 4294967168 }
  0xa5   :  { %92 = vsyncpa [#allocation5], 1 }
  0xa6   :  { %93 = vsyncpa [#allocation6], 1 }

</bundles_post_ra>
